<compile_context>
chip_gen: v5e
topology: v5e:2x2
jax: 0.10.0
libtpu: 0.0.40
codegen_flags: <defaults>
</compile_context>

<pallas_src>
import jax
import jax.numpy as jnp
from jax.experimental import pallas as pl
from jax.experimental.pallas import tpu as pltpu


# ---------------------------------------------------------------------------
# Pallas kernel
# ---------------------------------------------------------------------------
def _make_temporal_block_kernel(lanes, L, K, dil, c_in, c_out, has_downsample):
    """Fused kernel for one folded batch block of `lanes = bn * L` time steps."""
    shifts = [dil * (K - 1 - k) for k in range(K)]   # causal delay of tap k
    use_roll = (lanes % 128 == 0)                    # XLU lane-rotate fast path

    def kernel(x_ref, t_ref, w1_ref, b1_ref, w2_ref, b2_ref, o_ref):
        # Within-element time index of every folded lane position (1, lanes).
        t_local = t_ref[...]

        def shift_right(a, sh):
            if use_roll:
                # XLU lane rotate: runs on a slot the VPU/MXU don't use.
                return pltpu.roll(a, sh, axis=1)
            # Fallback for lane widths that are not a multiple of 128.
            return jnp.concatenate(
                [jnp.zeros((a.shape[0], sh), a.dtype), a[:, :lanes - sh]],
                axis=1)

        def tap(a, sh):
            # Input delayed by `sh` samples, causally zero-padded *per batch
            # element*: the t_local mask zeroes both the causal pad region and
            # any cross-element leakage from the rotate wrap-around.
            if sh == 0:
                return a
            if sh >= L:
                return jnp.zeros_like(a)
            return jnp.where(t_local < sh, jnp.zeros_like(a), shift_right(a, sh))

        def im2col(a):
            # Stack the K dilated causal taps along sublanes -> (K*rows, lanes),
            # cast once to bf16 for the MXU.
            taps = [tap(a, sh) for sh in shifts]
            slab = jnp.concatenate(taps, axis=0) if K > 1 else taps[0]
            return slab.astype(jnp.bfloat16)

        x = x_ref[0]                                   # (Cin, lanes) f32

        # conv1 (+ fused 1x1 downsample rows when present): ONE MXU matmul.
        z1 = jnp.dot(w1_ref[...], im2col(x),
                     preferred_element_type=jnp.float32) + b1_ref[...]
        if has_downsample:
            h1 = jnp.maximum(z1[:c_out], 0.0)          # (Cout, lanes)
            res = z1[c_out:]                           # (Cout, lanes), no relu
        else:
            h1 = jnp.maximum(z1, 0.0)
            res = x                                    # identity skip (f32)
        # dropout1: identity at inference time.

        # conv2 on the intermediate activation (causal pad via roll+mask).
        h2 = jnp.dot(w2_ref[...], im2col(h1),
                     preferred_element_type=jnp.float32) + b2_ref[...]
        h2 = jnp.maximum(h2, 0.0)
        # dropout2: identity at inference time.

        o_ref[0] = jnp.maximum(h2 + res, 0.0).astype(o_ref.dtype)

    return kernel


# ---------------------------------------------------------------------------
# JAX wrapper (weight-norm reparam, downsample fusion, batch folding)
# ---------------------------------------------------------------------------
def _weight_norm(v, g):
    # PyTorch weight_norm (dim=0): w = g * v / ||v||, norm over (Cin, K) per Cout.
    norm = jnp.sqrt(jnp.sum(v * v, axis=(1, 2), keepdims=True))
    return g[:, None, None] * v / norm


def _vmem_capacity_bytes():
    try:
        cap = getattr(pltpu.get_tpu_info(), "vmem_capacity_bytes", None)
        if cap:
            return int(cap)
    except Exception:
        pass
    return 64 * 1024 * 1024       # conservative fallback (v7x physical VMEM)


def _pick_batch_block(n, c_in, c_out, length, K, budget_bytes):
    """Largest bn (divisor of n) whose per-step VMEM footprint fits the budget.
    Counts the double-buffered f32 I/O blocks AND the in-kernel im2col slabs /
    f32 intermediates.  Prefers >= 2 grid steps (megacore sharding) unless
    that forfeits a lane-dense (>= 512-lane) block."""
    def per_step_bytes(bn):
        lanes = bn * length
        io = 2 * 4 * lanes * (c_in + c_out)                  # 2x-buffered f32 I/O
        interm = lanes * (2 * K * (c_in + c_out)             # bf16 im2col slabs
                          + 4 * (3 * c_out + c_in))          # f32 h1/h2/res (+x)
        return io + interm

    divisors = [d for d in range(1, n + 1) if n % d == 0]
    fitting = [d for d in divisors if per_step_bytes(d) <= budget_bytes]
    if not fitting:
        return 1
    two_step = [d for d in fitting if n // d >= 2]
    if two_step and (max(two_step) * length >= 512 or max(fitting) * length < 512):
        return max(two_step)
    return max(fitting)


def temporal_block_forward(x, params, *, kernel_size, stride, dilation, padding):
    """x: (N, Cin, L) float32 in PyTorch NCL layout. Returns (N, Cout, L)."""
    assert stride == 1, "TemporalBlock residual add requires stride == 1"
    assert padding == dilation * (kernel_size - 1), \
        "causal pad+chomp requires padding == dilation*(kernel_size-1)"

    N, Cin, L = x.shape
    K, dil = kernel_size, dilation

    # Effective (weight-normed) conv weights, PyTorch layout (Cout, Cin, K).
    w1 = _weight_norm(params["v1"], params["g1"])
    w2 = _weight_norm(params["v2"], params["g2"])
    Cout = w1.shape[0]
    has_ds = Cin != Cout

    # Flatten to (Cout, K*C) matching the im2col row order (row = k*C + c,
    # tap k delayed by dil*(K-1-k)).
    w1_flat = jnp.transpose(w1, (0, 2, 1)).reshape(Cout, K * Cin)
    w2_flat = jnp.transpose(w2, (0, 2, 1)).reshape(Cout, K * Cout).astype(jnp.bfloat16)
    b1 = params["b1"].astype(jnp.float32)
    b2r = params["b2"].reshape(Cout, 1).astype(jnp.float32)

    # Fuse the 1x1 downsample into conv1: its weights live in the zero-shift
    # tap's columns (k = K-1), stacked as extra output rows.
    if has_ds:
        wd = params["wd"][:, :, 0].astype(jnp.float32)            # (Cout, Cin)
        wd_pad = jnp.zeros((Cout, K * Cin), jnp.float32).at[:, (K - 1) * Cin:].set(wd)
        w1_stack = jnp.concatenate([w1_flat, wd_pad], axis=0)     # (2*Cout, K*Cin)
        b1_stack = jnp.concatenate([b1, params["bd"].astype(jnp.float32)])
    else:
        w1_stack, b1_stack = w1_flat, b1
    w_rows = w1_stack.shape[0]
    w1_stack = w1_stack.astype(jnp.bfloat16)
    b1_stack = b1_stack.reshape(w_rows, 1)

    # Generation-aware VMEM budgeting (v7x: 64 MiB physical, v5e/v6e: 128 MiB).
    vmem_cap = _vmem_capacity_bytes()
    vmem_limit = min(int(0.75 * vmem_cap), 96 * 1024 * 1024)
    bn = _pick_batch_block(N, Cin, Cout, L, K, vmem_limit // 2)
    lanes = bn * L
    n_blocks = N // bn

    # Fold bn batch elements onto the lane/time axis -> (N//bn, C, bn*L) slabs
    # so the matmuls/stores see a lane-dense width.  Pure layout plumbing.
    xf = (x.astype(jnp.float32)
            .reshape(n_blocks, bn, Cin, L)
            .transpose(0, 2, 1, 3)
            .reshape(n_blocks, Cin, lanes))
    # Within-element time index per folded lane (per-element causal masking).
    t_local = jnp.tile(jnp.arange(L, dtype=jnp.int32), bn).reshape(1, lanes)

    kernel = _make_temporal_block_kernel(lanes, L, K, dil, Cin, Cout, has_ds)

    flops = 2 * N * L * (w_rows * K * Cin + Cout * K * Cout)
    bytes_accessed = (N * Cin * L * 4 + N * Cout * L * 4
                      + w_rows * K * Cin * 2 + Cout * K * Cout * 2
                      + (w_rows + Cout) * 4 + lanes * 4)
    cost = pl.CostEstimate(flops=flops, transcendentals=0,
                           bytes_accessed=bytes_accessed)

    out_f = pl.pallas_call(
        kernel,
        out_shape=jax.ShapeDtypeStruct((n_blocks, Cout, lanes), x.dtype),
        grid_spec=pltpu.PrefetchScalarGridSpec(
            num_scalar_prefetch=0,
            grid=(n_blocks,),
            in_specs=[
                pl.BlockSpec((1, Cin, lanes), lambda i: (i, 0, 0)),
                pl.BlockSpec((1, lanes), lambda i: (0, 0)),
                # Grid-invariant weights/biases (constant index_map).  Could be
                # single-buffered via pipeline_mode=pl.Buffered(1) to shave VMEM.
                pl.BlockSpec((w_rows, K * Cin), lambda i: (0, 0)),
                pl.BlockSpec((w_rows, 1), lambda i: (0, 0)),
                pl.BlockSpec((Cout, K * Cout), lambda i: (0, 0)),
                pl.BlockSpec((Cout, 1), lambda i: (0, 0)),
            ],
            out_specs=pl.BlockSpec((1, Cout, lanes), lambda i: (i, 0, 0)),
        ),
        compiler_params=pltpu.CompilerParams(
            dimension_semantics=("parallel",),
            vmem_limit_bytes=vmem_limit,
        ),
        cost_estimate=cost,
    )(xf, t_local, w1_stack, b1_stack, w2_flat, b2r)

    # Un-fold (N//bn, Cout, bn*L) -> (N, Cout, L).
    return (out_f.reshape(n_blocks, Cout, bn, L)
                 .transpose(0, 2, 1, 3)
                 .reshape(N, Cout, L))


# ---------------------------------------------------------------------------
# Pure-JAX reference (for correctness check)
# ---------------------------------------------------------------------------
def temporal_block_reference(x, params, *, kernel_size, dilation, padding):
    w1 = _weight_norm(params["v1"], params["g1"])
    w2 = _weight_norm(params["v2"], params["g2"])
    Cin = x.shape[1]
    Cout = w1.shape[0]

    def conv1d(h, w, b, dil, pad_left):
        out = jax.lax.conv_general_dilated(
            h, w, window_strides=(1,), padding=[(pad_left, 0)],
            rhs_dilation=(dil,), dimension_numbers=("NCH", "OIH", "NCH"))
        return out + b[None, :, None]

    # left-only padding == symmetric pad + chomp for causal convs
    h = jnp.maximum(conv1d(x, w1, params["b1"], dilation, padding), 0.0)
    h = jnp.maximum(conv1d(h, w2, params["b2"], dilation, padding), 0.0)
    if Cin != Cout:
        res = conv1d(x, params["wd"], params["bd"], 1, 0)
    else:
        res = x
    return jnp.maximum(h + res, 0.0)


# ---------------------------------------------------------------------------
if __name__ == "__main__":
    key = jax.random.PRNGKey(0)
    N, Cin, Cout, L = 2, 8, 16, 128
    K, stride, dilation = 3, 1, 2
    padding = (K - 1) * dilation

    ks = jax.random.split(key, 8)
    # weight_norm params: v ~ N(0, 0.01), g initialized to ||v|| (PyTorch default)
    v1 = 0.01 * jax.random.normal(ks[0], (Cout, Cin, K), jnp.float32)
    g1 = jnp.sqrt(jnp.sum(v1 * v1, axis=(1, 2)))
    b1 = 0.1 * jax.random.normal(ks[1], (Cout,), jnp.float32)
    v2 = 0.01 * jax.random.normal(ks[2], (Cout, Cout, K), jnp.float32)
    g2 = jnp.sqrt(jnp.sum(v2 * v2, axis=(1, 2)))
    b2 = 0.1 * jax.random.normal(ks[3], (Cout,), jnp.float32)
    wd = 0.01 * jax.random.normal(ks[4], (Cout, Cin, 1), jnp.float32)
    bd = 0.1 * jax.random.normal(ks[5], (Cout,), jnp.float32)
    params = dict(v1=v1, g1=g1, b1=b1, v2=v2, g2=g2, b2=b2, wd=wd, bd=bd)

    x = jax.random.normal(ks[6], (N, Cin, L), jnp.float32)

    fwd = jax.jit(temporal_block_forward,
                  static_argnames=("kernel_size", "stride", "dilation", "padding"))
    out = fwd(x, params, kernel_size=K, stride=stride,
              dilation=dilation, padding=padding)
    out = jax.block_until_ready(out)

    ref = temporal_block_reference(
        x, params, kernel_size=K, dilation=dilation, padding=padding)

    assert out.shape == (N, Cout, L), out.shape
    # bf16 MXU operands (f32 accumulation) -> slightly relaxed tolerance
    assert jnp.allclose(out, ref, atol=2e-3, rtol=2e-2), \
        float(jnp.max(jnp.abs(out - ref)))

    print("KERNEL_OK")
</pallas_src>

<mosaic_0001>
module attributes {stable_mosaic.version = 11 : i64} {
  func.func @kernel(%arg0: i32, %arg1: memref<1x8x128xf32, #tpu.memory_space<vmem>>, %arg2: memref<1x128xi32, #tpu.memory_space<vmem>>, %arg3: memref<32x24xbf16, #tpu.memory_space<vmem>>, %arg4: memref<32x1xf32, #tpu.memory_space<vmem>>, %arg5: memref<16x48xbf16, #tpu.memory_space<vmem>>, %arg6: memref<16x1xf32, #tpu.memory_space<vmem>>, %arg7: memref<1x16x128xf32, #tpu.memory_space<vmem>>) attributes {dimension_semantics = [#tpu.dimension_semantics<parallel>], iteration_bounds = array<i64: 2>, scalar_prefetch = 0 : i64, scratch_operands = 0 : i64, tpu.core_type = #tpu.core_type<tc>, window_params = [{transform_indices = @transform_0, window_bounds = array<i64: 1, 8, 128>}, {pipeline_mode = #tpu.pipeline_mode<synchronous>, transform_indices = @transform_1, window_bounds = array<i64: 1, 128>}, {pipeline_mode = #tpu.pipeline_mode<synchronous>, transform_indices = @transform_2, window_bounds = array<i64: 32, 24>}, {pipeline_mode = #tpu.pipeline_mode<synchronous>, transform_indices = @transform_3, window_bounds = array<i64: 32, 1>}, {pipeline_mode = #tpu.pipeline_mode<synchronous>, transform_indices = @transform_4, window_bounds = array<i64: 16, 48>}, {pipeline_mode = #tpu.pipeline_mode<synchronous>, transform_indices = @transform_5, window_bounds = array<i64: 16, 1>}, {transform_indices = @transform_6, window_bounds = array<i64: 1, 16, 128>}]} {
    %c0 = arith.constant 0 : index
    %c0_0 = arith.constant 0 : index
    %0 = vector.load %arg2[%c0, %c0_0] : memref<1x128xi32, #tpu.memory_space<vmem>>, vector<1x128xi32>
    %c0_1 = arith.constant 0 : index
    %c0_2 = arith.constant 0 : index
    %c0_3 = arith.constant 0 : index
    %1 = vector.load %arg1[%c0_1, %c0_2, %c0_3] : memref<1x8x128xf32, #tpu.memory_space<vmem>>, vector<1x8x128xf32>
    %2 = vector.shape_cast %1 : vector<1x8x128xf32> to vector<8x128xf32>
    %c0_4 = arith.constant 0 : index
    %c0_5 = arith.constant 0 : index
    %3 = vector.load %arg3[%c0_4, %c0_5] : memref<32x24xbf16, #tpu.memory_space<vmem>>, vector<32x24xbf16>
    %c4_i32 = arith.constant 4 : i32
    %4 = vector.broadcast %c4_i32 : i32 to vector<1x128xi32>
    %5 = arith.cmpi slt, %0, %4 : vector<1x128xi32>
    %cst = arith.constant 0.000000e+00 : f32
    %6 = vector.broadcast %cst : f32 to vector<8x128xf32>
    %c4_i32_6 = arith.constant 4 : i32
    %7 = tpu.dynamic_rotate %2 by %c4_i32_6 dim 1 : vector<8x128xf32>, i32 -> vector<8x128xf32>
    %8 = vector.shape_cast %5 : vector<1x128xi1> to vector<1x128xi1>
    %9 = vector.broadcast %8 : vector<1x128xi1> to vector<8x128xi1>
    %10 = arith.select %9, %6, %7 : vector<8x128xi1>, vector<8x128xf32>
    %c2_i32 = arith.constant 2 : i32
    %11 = vector.broadcast %c2_i32 : i32 to vector<1x128xi32>
    %12 = arith.cmpi slt, %0, %11 : vector<1x128xi32>
    %cst_7 = arith.constant 0.000000e+00 : f32
    %13 = vector.broadcast %cst_7 : f32 to vector<8x128xf32>
    %c2_i32_8 = arith.constant 2 : i32
    %14 = tpu.dynamic_rotate %2 by %c2_i32_8 dim 1 : vector<8x128xf32>, i32 -> vector<8x128xf32>
    %15 = vector.shape_cast %12 : vector<1x128xi1> to vector<1x128xi1>
    %16 = vector.broadcast %15 : vector<1x128xi1> to vector<8x128xi1>
    %17 = arith.select %16, %13, %14 : vector<8x128xi1>, vector<8x128xf32>
    %18 = tpu.concatenate %10, %17, %2 in 0 : vector<8x128xf32>, vector<8x128xf32>, vector<8x128xf32> -> vector<24x128xf32>
    %19 = arith.truncf %18 : vector<24x128xf32> to vector<24x128xbf16>
    %cst_9 = arith.constant dense<0.000000e+00> : vector<32x128xf32>
    %20 = tpu.matmul %3, %19, %cst_9 {dimension_numbers = #tpu.dot_dimension_numbers<[1], [0], [0], [1], [0, 0, 1, 1], [], []>} : vector<32x24xbf16>, vector<24x128xbf16>, vector<32x128xf32> -> vector<32x128xf32>
    %c0_10 = arith.constant 0 : index
    %c0_11 = arith.constant 0 : index
    %21 = vector.load %arg4[%c0_10, %c0_11] : memref<32x1xf32, #tpu.memory_space<vmem>>, vector<32x1xf32>
    %22 = vector.broadcast %21 : vector<32x1xf32> to vector<32x128xf32>
    %23 = arith.addf %20, %22 : vector<32x128xf32>
    %24 = vector.extract_strided_slice %23 {offsets = [0, 0], sizes = [16, 128], strides = [1, 1]} : vector<32x128xf32> to vector<16x128xf32>
    %cst_12 = arith.constant 0.000000e+00 : f32
    %25 = vector.broadcast %cst_12 : f32 to vector<16x128xf32>
    %26 = arith.maximumf %24, %25 : vector<16x128xf32>
    %27 = vector.extract_strided_slice %23 {offsets = [16, 0], sizes = [16, 128], strides = [1, 1]} : vector<32x128xf32> to vector<16x128xf32>
    %c0_13 = arith.constant 0 : index
    %c0_14 = arith.constant 0 : index
    %28 = vector.load %arg5[%c0_13, %c0_14] : memref<16x48xbf16, #tpu.memory_space<vmem>>, vector<16x48xbf16>
    %c4_i32_15 = arith.constant 4 : i32
    %29 = vector.broadcast %c4_i32_15 : i32 to vector<1x128xi32>
    %30 = arith.cmpi slt, %0, %29 : vector<1x128xi32>
    %cst_16 = arith.constant 0.000000e+00 : f32
    %31 = vector.broadcast %cst_16 : f32 to vector<16x128xf32>
    %c4_i32_17 = arith.constant 4 : i32
    %32 = tpu.dynamic_rotate %26 by %c4_i32_17 dim 1 : vector<16x128xf32>, i32 -> vector<16x128xf32>
    %33 = vector.shape_cast %30 : vector<1x128xi1> to vector<1x128xi1>
    %34 = vector.broadcast %33 : vector<1x128xi1> to vector<16x128xi1>
    %35 = arith.select %34, %31, %32 : vector<16x128xi1>, vector<16x128xf32>
    %c2_i32_18 = arith.constant 2 : i32
    %36 = vector.broadcast %c2_i32_18 : i32 to vector<1x128xi32>
    %37 = arith.cmpi slt, %0, %36 : vector<1x128xi32>
    %cst_19 = arith.constant 0.000000e+00 : f32
    %38 = vector.broadcast %cst_19 : f32 to vector<16x128xf32>
    %c2_i32_20 = arith.constant 2 : i32
    %39 = tpu.dynamic_rotate %26 by %c2_i32_20 dim 1 : vector<16x128xf32>, i32 -> vector<16x128xf32>
    %40 = vector.shape_cast %37 : vector<1x128xi1> to vector<1x128xi1>
    %41 = vector.broadcast %40 : vector<1x128xi1> to vector<16x128xi1>
    %42 = arith.select %41, %38, %39 : vector<16x128xi1>, vector<16x128xf32>
    %43 = tpu.concatenate %35, %42, %26 in 0 : vector<16x128xf32>, vector<16x128xf32>, vector<16x128xf32> -> vector<48x128xf32>
    %44 = arith.truncf %43 : vector<48x128xf32> to vector<48x128xbf16>
    %cst_21 = arith.constant dense<0.000000e+00> : vector<16x128xf32>
    %45 = tpu.matmul %28, %44, %cst_21 {dimension_numbers = #tpu.dot_dimension_numbers<[1], [0], [0], [1], [0, 0, 1, 1], [], []>} : vector<16x48xbf16>, vector<48x128xbf16>, vector<16x128xf32> -> vector<16x128xf32>
    %c0_22 = arith.constant 0 : index
    %c0_23 = arith.constant 0 : index
    %46 = vector.load %arg6[%c0_22, %c0_23] : memref<16x1xf32, #tpu.memory_space<vmem>>, vector<16x1xf32>
    %47 = vector.broadcast %46 : vector<16x1xf32> to vector<16x128xf32>
    %48 = arith.addf %45, %47 : vector<16x128xf32>
    %cst_24 = arith.constant 0.000000e+00 : f32
    %49 = vector.broadcast %cst_24 : f32 to vector<16x128xf32>
    %50 = arith.maximumf %48, %49 : vector<16x128xf32>
    %51 = arith.addf %50, %27 : vector<16x128xf32>
    %cst_25 = arith.constant 0.000000e+00 : f32
    %52 = vector.broadcast %cst_25 : f32 to vector<16x128xf32>
    %53 = arith.maximumf %51, %52 : vector<16x128xf32>
    %c0_26 = arith.constant 0 : index
    %c0_27 = arith.constant 0 : index
    %c0_28 = arith.constant 0 : index
    %54 = vector.load %arg7[%c0_26, %c0_27, %c0_28] : memref<1x16x128xf32, #tpu.memory_space<vmem>>, vector<1x16x128xf32>
    %55 = vector.shape_cast %54 : vector<1x16x128xf32> to vector<16x128xf32>
    %56 = vector.shape_cast %53 : vector<16x128xf32> to vector<1x16x128xf32>
    tpu.vector_store %arg7[%c0_26, %c0_27, %c0_28], %56 {strides = array<i32>} : memref<1x16x128xf32, #tpu.memory_space<vmem>>, vector<1x16x128xf32>,
    return
  }
  func.func @transform_0(%arg0: i32) -> (i32, i32, i32) {
    %c0_i32 = arith.constant 0 : i32
    %c0_i32_0 = arith.constant 0 : i32
    %c0_i32_1 = arith.constant 0 : i32
    return %arg0, %c0_i32, %c0_i32_0 : i32, i32, i32
  }
  func.func @transform_1(%arg0: i32) -> (i32, i32) {
    %c0_i32 = arith.constant 0 : i32
    %c0_i32_0 = arith.constant 0 : i32
    %c0_i32_1 = arith.constant 0 : i32
    return %c0_i32, %c0_i32_0 : i32, i32
  }
  func.func @transform_2(%arg0: i32) -> (i32, i32) {
    %c0_i32 = arith.constant 0 : i32
    %c0_i32_0 = arith.constant 0 : i32
    %c0_i32_1 = arith.constant 0 : i32
    return %c0_i32, %c0_i32_0 : i32, i32
  }
  func.func @transform_3(%arg0: i32) -> (i32, i32) {
    %c0_i32 = arith.constant 0 : i32
    %c0_i32_0 = arith.constant 0 : i32
    %c0_i32_1 = arith.constant 0 : i32
    return %c0_i32, %c0_i32_0 : i32, i32
  }
  func.func @transform_4(%arg0: i32) -> (i32, i32) {
    %c0_i32 = arith.constant 0 : i32
    %c0_i32_0 = arith.constant 0 : i32
    %c0_i32_1 = arith.constant 0 : i32
    return %c0_i32, %c0_i32_0 : i32, i32
  }
  func.func @transform_5(%arg0: i32) -> (i32, i32) {
    %c0_i32 = arith.constant 0 : i32
    %c0_i32_0 = arith.constant 0 : i32
    %c0_i32_1 = arith.constant 0 : i32
    return %c0_i32, %c0_i32_0 : i32, i32
  }
  func.func @transform_6(%arg0: i32) -> (i32, i32, i32) {
    %c0_i32 = arith.constant 0 : i32
    %c0_i32_0 = arith.constant 0 : i32
    %c0_i32_1 = arith.constant 0 : i32
    return %arg0, %c0_i32, %c0_i32_0 : i32, i32, i32
  }
}

</mosaic_0001>

<bundles_post_ra>
// kernel: temporal_block_forward.1
= control target key start
LH: loop header
LB: loop body
LE: loop exit
PB: predicated region body
PF: predicated region fallthrough
CT: control target
= control target key end

     0   :  { %11 = vsyncpa [#allocation3], 0  ;;  %s821_s0 = inlined_call_operand.vmem [shape: f32[2,8,128], index: 0, kind: input, shape index: {}]   ;;  %s822_s1 = inlined_call_operand.vmem [shape: s32[1,128], index: 1, kind: input, shape index: {}]   ;;  %s823_s2 = inlined_call_operand.vmem [shape: bf16[32,24], index: 2, kind: input, shape index: {}]   ;;  %s824_s3 = inlined_call_operand.vmem [shape: f32[32,1], index: 3, kind: input, shape index: {}]   ;;  %s825_s4 = inlined_call_operand.vmem [shape: bf16[16,48], index: 4, kind: input, shape index: {}]   ;;  %s826_s5 = inlined_call_operand.vmem [shape: f32[16,1], index: 5, kind: input, shape index: {}]   ;;  %s827_s6 = inlined_call_operand.hbm [shape: f32[2,16,128], index: 6, kind: output, shape index: {}]  }
   0x1   :  { %13 = vsyncpa [#allocation3 + $0x1], 0  ;;  %s684_s21 = smov 0   ;;  %s686_s22 = smov 0  }
   0x2   :  { %s688_s23 = smov 0   ;;  %s690_s24 = smov 0  }
   0x3 LB: > { %s705_s25 = sadd.s32 4294967295, %s642_s24   ;;  %s474_s26 = sadd.s32 4294967294, %s642_s24   ;;  %s642_s24 = sphi %s690_s24, %s837_s24   ;;  %s638_s23 = sphi %s688_s23, %s836_s23   ;;  %s634_s22 = sphi %s686_s22, %s835_s22   ;;  %s630_s21 = sphi %s684_s21, %s834_s21  }
   0x4   : > { %s709_s27 = sadd.s32 1, %s642_s24   ;;  %s157_s28 = sadd.s32 1, %s638_s23 }
   0x5   : > { %s154_s29 = ssub.s32 %s642_s24, %s709_s27  ;;  %p167_p0 = scmp.ne.s32.totalorder %s638_s23, %s634_s22 }
   0x6   : > { %p155_p1 = scmp.eq.s32.totalorder %s154_s29, 0  ;;  %p168_p2 = scmp.eq.s32.totalorder %s705_s25, 1 }
   0x7   : > { %p173_p3 = scmp.ne.s32.totalorder %s634_s22, %s630_s21  ;;  %p174_p4 = scmp.eq.s32.totalorder %s474_s26, 1 }
   0x8   : > { %s720_s30 = scalar_select %p155_p1, %s638_s23, %s157_s28  }
   0x9   : > { %p722_p5 = por %p168_p2, %p167_p0  ;;  %p726_p6 = por %p174_p4, %p173_p3 }
   0xa   : > { %p477_p7 = scmp.ge.s32.totalorder %s642_s24, 1  ;;  %p214_p8 = scmp.lt.s32.totalorder %s642_s24, 3 }
   0xc   : > { %p215_p9 = pnand %p477_p7, %p214_p8 }
   0xd   : > { %p243_p10 = scmp.lt.s32.totalorder (!%p215_p9), %s705_s25, 1  ;;  %s645_s14 = smov (!%p215_p9), 4  }
   0xe   : > { %218 = sbr.rel (%p215_p9) target bundleno = 544 (0x220), region = 44  ;;  %s646_s15 = smov (!%p215_p9), 2  }
   0xf   : > { %s240_s26 = sand.u32 (!%p215_p9), 1, %s634_s22   ;;  %s518_s29 = sshll.u32 (!%p215_p9), %s705_s25, 4 }
  0x10   : > { %s478_s28 = sshll.u32 (!%p215_p9), %s240_s26, 4  ;;  %s408_s11 = scalar_lea.hbm (!%p215_p9), %s827_s6, %s518_s29 }
  0x11   : > { %s242_s12 = scalar_lea.vmem (!%p215_p9), [#allocation2], %s478_s28  ;;  %s411_s16 = sshll.u32 (!%p215_p9), %s408_s11, 4  ;;  %s412_s16 = int_to_ptr.hbm [resolvable:$true] %s411_s16 }
  0x12   : > { %s594_s17 = sshra.s32 (!%p215_p9), %s412_s16, 4  ;;  %s595_s17 = int_to_ptr.hbm [resolvable:$true] %s594_s17 }
  0x13   : > { %v644_v0 = vmov 0   ;;  %s244_s9 = scalar_select %p243_p10, %s705_s25, 1  ;;  %v270_v2 = vld [vmem:[%s824_s3] sm:$0xff]  ;;  %vm311_vm0 = vcmask 1043456   ;;  %v271_v5 = vld [vmem:[%s824_s3 + $0x8] sm:$0xff]  ;;  %v273_v7 = vld [vmem:[%s824_s3 + $0x18] sm:$0xff] }
  0x14   : > { %567 = vset.pattern.permute.xlu1 %v644_v0  ;;  %578 = vset.pattern.permute.xlu0 %v644_v0  ;;  %v354_v6 = vld [vmem:[%s826_s5 + $0x8] sm:$0xff]  ;;  %v248_v8 = vld [vmem:[%s822_s1] sm:$0x1]  ;;  %vm304_vm6 = vcmask 195584   ;;  %v272_v31 = vld [vmem:[%s824_s3 + $0x10] sm:$0xff]  ;;  %vm370_vm9 = vcmask 392192   ;;  %p601_p0 = scmp.lt.s32.totalorder %s595_s17, %s827_s6 }
  0x15   : > { %579 = vset.pattern.permute.xlu2 %v644_v0  ;;  %s479_s10 = sshll.u32 %s244_s9, 3  ;;  %276 = vperm.xlu1 %567, %v270_v2   ;;  %vm254_vm1 = vcmp.lt.s32.totalorder %v248_v8, 4  ;;  %vm261_vm2 = vcmp.lt.s32.totalorder %v248_v8, 2  ;;  %v515_v18 = vld [vmem:[%s823_s2] sm:$0xff]  ;;  %v516_v19 = vld [vmem:[%s823_s2 + $0x8] sm:$0xff]  ;;  %s397_s25 = scalar_lea.sflag [#allocation3], %s240_s26 }
  0x16   : > { %s246_s13 = scalar_lea.vmem %s821_s0, %s479_s10  ;;  %v257_v9 = vsel %vm254_vm1, 1, %v644_v0  ;;  %v264_v10 = vsel %vm261_vm2, 1, %v644_v0  ;;  %v353_v30 = vld [vmem:[%s826_s5] sm:$0xff]  ;;  %s596_s18 = scalar_lea.hbm %s595_s17, 16 }
  0x17   : > { %v249_v1 = vld [vmem:[%s246_s13] sm:$0xff]  ;;  %v258_v12 = vperm.slane %v257_v9, 0  ;;  %v265_v13 = vperm.slane %v264_v10, 0  ;;  %s409_s13 = sshll.u32 %s242_s12, 4  ;;  %p597_p11 = scmp.ne.s32.totalorder %s595_s17, %s596_s18  ;;  %s410_s13 = int_to_ptr.vmem [resolvable:$true] %s409_s13 }
  0x18   : > { %255 = vrot.lane.b32.xlu0 %v249_v1, %s645_s14  ;;  %v269_v3 = vpack.c.bf16 %v249_v1, %v249_v1  ;;  %v517_v40 = vld [vmem:[%s825_s4] sm:$0xff] }
  0x19   : > { %vm754_vm3 = vcmp.ne.s32.totalorder %v265_v13, 1  ;;  %vm758_vm4 = vcmp.ne.s32.totalorder %v258_v12, 1  ;;  %p598_p12 = pnand %p597_p11, %p722_p5 }
  0x1a   : > { %v313_v4 = vsel %vm311_vm0, %v269_v3, 0  ;;  %vm490_vm5 = vmpackc.low %vm754_vm3, %vm758_vm4 }
  0x1b   : > { %321 = vmatpush.bf16.msra.mxu0 %v313_v4  ;;  %521 = vmatpush.bf16.msra.mxu2 %v313_v4  ;;  %vm501_vm7 = vmpackc.low %vm754_vm3, %vm754_vm3  ;;  %p599_p13 = pneg %p598_p12 }
  0x1c   : > { %vm506_vm8 = vmpackc.low %vm758_vm4, %vm758_vm4 }
  0x1d   : > { %281 = vperm.xlu1 %567, %v271_v5  }
  0x20   : > { %262 = vrot.lane.b32.xlu0 %v249_v1, %s646_s15 }
  0x25   : > { %362 = vperm.xlu1 %567, %v354_v6  }
  0x28   : > { %357 = vperm.xlu0 %578, %v353_v30  }
  0x2d   : > { %291 = vperm.xlu1 %567, %v273_v7  }
  0x87   : > { %v277_v20 = vpop.permute.xlu1 %276 }
  0x8a   : > { %v256_v11 = vpop.permute.xlu0 %255 }
  0x8f   : > { %v282_v23 = vpop.permute.xlu1 %281 }
  0x92   : > { %v263_v16 = vpop.permute.xlu0 %262 }
  0x93   : > { %v491_v17 = vpack.c.bf16 %v263_v16, %v256_v11 }
  0x95   : > { %492 = vmatpush.bf16.msk.msra.mxu0 %vm490_vm5, %v491_v17  ;;  %522 = vmatpush.bf16.msk.msra.mxu2 %vm490_vm5, %v491_v17 }
  0x97   : > { %v363_v44 = vpop.permute.xlu1 %362 }
  0x98   : > { %493 = vmatmul.msk.bf16.vlgmr.msra.gmra.mxu0 %vm304_vm6, %v515_v18  ;;  %494 = vmatmul.msk.bf16.vlgmr.msra.gmra.mxu2 %vm304_vm6, %v516_v19 }
  0x9a   : > { %v358_v42 = vpop.permute.xlu0 %357 }
  0x9f   : > { %v292_v54 = vpop.permute.xlu1 %291 }
 0x115   : > { %v324_v21 = vpop.f32.mrf.mxu0 }
 0x116   : > { %v325_v22 = vadd.f32 %v324_v21, %v277_v20 }
 0x118   : > { %v334_v26 = vmax.f32 %v325_v22, 0.0 }
 0x11b   : > { %v329_v41 = vpop.f32.mrf.mxu2 }
 0x11d   : > { %v326_v24 = vpop.f32.mrf.mxu0 }
 0x11e   : > { %v327_v25 = vadd.f32 %v326_v24, %v282_v23 }
 0x120   : > { %v335_v27 = vmax.f32 %v327_v25, 0.0 }
 0x122   : > { %v568_v28 = vpack.i.bf16 %v335_v27, %v334_v26  ;;  %v352_v29 = vpack.c.bf16 %v335_v27, %v334_v26 }
 0x123   : > { %v331_v51 = vpop.f32.mrf.mxu2 }
 0x124   : > { %569 = vrot.lane.b32.xlu2 %v568_v28, %s646_s15  ;;  %379 = vmatpush.bf16.msra.mxu1 %v352_v29  ;;  %v332_v55 = vadd.f32 %v331_v51, %v292_v54 }
 0x12c   : > { %574 = vrot.lane.b32.xlu2 %v568_v28, %s645_s14  ;;  %s600_s14 = scalar_lea.hbm %s827_s6, 32 }
 0x12d   : > { %p602_p1 = scmp.lt.s32.totalorder %s600_s14, %s596_s18 }
 0x12f   : > { %p603_p2 = por %p602_p1, %p601_p0 }
 0x131   : > { %p604_p3 = pnand %p603_p2, %p599_p13 }
 0x134   : > { %286 = vperm.xlu2 %579, %v272_v31  }
 0x17e   : > { %v570_v32 = vpop.permute.xlu2 %569 }
 0x17f   : > { %v572_v33 = vunpack.i.h.bf16 %v570_v32  ;;  %v571_v34 = vunpack.i.l.bf16 %v570_v32 }
 0x181   : > { %v502_v35 = vpack.c.bf16 %v572_v33, %v571_v34 }
 0x183   : > { %503 = vmatpush.bf16.msk.msra.mxu1 %vm501_vm7, %v502_v35 }
 0x186   : > { %v575_v36 = vpop.permute.xlu2 %574 }
 0x187   : > { %v577_v37 = vunpack.i.h.bf16 %v575_v36  ;;  %v576_v38 = vunpack.i.l.bf16 %v575_v36 }
 0x189   : > { %v507_v39 = vpack.c.bf16 %v577_v37, %v576_v38 }
 0x18b   : > { %508 = vmatpush.bf16.msk.msra.mxu1 %vm506_vm8, %v507_v39 }
 0x18e   : > { %509 = vmatmul.msk.bf16.vlgmr.msra.gmra.mxu1 %vm370_vm9, %v517_v40  ;;  %v287_v43 = vpop.permute.xlu2 %286 }
 0x18f   : > { %v330_v47 = vadd.f32 %v329_v41, %v287_v43 }
 0x20b   : > { %v383_v45 = vpop.f32.mrf.mxu1 }
 0x20c   : > { %v384_v46 = vadd.f32 %v383_v45, %v358_v42 }
 0x20e   : > { %v388_v48 = vmax.f32 %v384_v46, 0.0 }
 0x210   : > { %v390_v49 = vadd.f32 %v388_v48, %v330_v47 }
 0x212   : > { %v392_v50 = vmax.f32 %v390_v49, 0.0 }
 0x213   : > { %v385_v52 = vpop.f32.mrf.mxu1 }
 0x214   : > { %394 = vst [vmem:[%s242_s12] sm:$0xff] %v392_v50  ;;  %v386_v53 = vadd.f32 %v385_v52, %v363_v44 }
 0x216   : > { %v389_v56 = vmax.f32 %v386_v53, 0.0 }
 0x218   : > { %v391_v57 = vadd.f32 %v389_v56, %v332_v55 }
 0x21a   : > { %v393_v58 = vmax.f32 %v391_v57, 0.0 }
 0x21c   : > { %395 = vst [vmem:[%s242_s12 + $0x8] sm:$0xff] %v393_v58 }
 0x21d   : > { %607 = shalt.err (!%p604_p3)
}
 0x21e   : > { %s647_s26 = smov 128   ;;  %s648_s29 = smov 8  }
 0x21f   : > { %523 = dma.vmem_to_hbm [thread:$0]  (%p722_p5), %s410_s13, 256, %s412_s16, %s397_s25, %s647_s26, %s647_s26, %s648_s29  }
 0x220 PF: > { %p529_p4 = scmp.ge.s32.totalorder %s642_s24, 2  ;;  %s426_s9 = sand.u32 1, %s630_s21  }
 0x221   : > { %s427_s10 = scalar_lea.sflag [#allocation3], %s426_s9 }
 0x222   : > { %p526_p7 = pnand %p529_p4, %p726_p6 }
 0x224   : > { %p527_p8 = pneg %p526_p7 }
 0x226   : > { %625 = dma.done.wait (%p527_p8), %s427_s10, 256  }
 0x227   : > { %627 = vsyncadd (%p527_p8), %s427_s10, 4294967040  ;;  %p16_p9 = scmp.ge.s32.totalorder %s709_s27, 4   ;;  %s834_s21 = smov %s634_s22 }
 0x228   : > { %s835_s22 = smov %s638_s23  ;;  %s836_s23 = smov %s720_s30 }
 0x229   : > { %s837_s24 = smov %s709_s27  ;;  %18 = sbr.rel (!%p16_p9) target bundleno = 3 (0x3), region = 79 }
 0x22e   :  { %433 = vsyncpa [#allocation3], 1 }
 0x22f   :  { %435 = vsyncpa [#allocation3 + $0x1], 1 }

</bundles_post_ra>
